<compile_context>
chip_gen: v7x
topology: tpu7x:2x2x1
jax: 0.10.0
libtpu: 0.0.40
codegen_flags: <defaults>
</compile_context>

<pallas_src>
import functools

import jax
import jax.numpy as jnp
from jax.experimental import pallas as pl
from jax.experimental.pallas import tpu as pltpu

LW = 128   # lane width of all padded weight / state blocks
HH = 64    # half split: exp state lanes [0, HH), qry state lanes [HH, 2*HH)
CP = 128   # padded class width (lane-dense final store)


def _full_spec(shape):
    """Whole-array block for a (1,)-grid pallas_call with scalar prefetch."""
    nd = len(shape)
    return pl.BlockSpec(tuple(shape), lambda i, *prefetch: (0,) * nd)


# ----------------------------------------------------------------------------
# Single fused kernel: Exp-RNN + Query-RNN + para_encoder attention + linearfc
# ----------------------------------------------------------------------------
def fused_forward_kernel(pos_ref,     # SMEM [B] int32   pos_idx   (scalar prefetch)
                         pidx_ref,    # SMEM [B] int32   para_idx  (scalar prefetch)
                         x_ref,       # [T*Bp, E]  bf16  time-major embedded tokens
                         mask_ref,    # [P, Bp]    f32   paraphrase validity mask (p-major)
                         paraf_ref,   # [P*Bp, E]  bf16  mean-pooled paraphrase feats (p-major)
                         wxh_ref,     # [E, 128]   bf16  [exp_wxh | qry_wxh] packed
                         whh_ref,     # [128, 128] bf16  blockdiag(exp_whh, qry_whh)
                         brnn_ref,    # [1, 128]   f32
                         wp_ref,      # [E, 128]   bf16
                         wq_ref,      # [128, 128] bf16  (rows [HH,HH+H) -> cols [0,H))
                         bp_ref,      # [1, 128]   f32
                         w1_ref,      # [128, Cp]  bf16  (rows [0,H) active)
                         w2_ref,      # [128, Cp]  bf16  (rows [0,H) active)
                         bfc_ref,     # [1, Cp]    f32
                         out_ref):    # [Bp, Cp]   f32   padded logits
    P, Bp = mask_ref.shape
    T = x_ref.shape[0] // Bp
    B = pos_ref.shape[0]

    # ---- selection vectors from SMEM scalars (no one-hot inputs / DMAs) ----
    row_b = jax.lax.broadcasted_iota(jnp.int32, (Bp, 1), 0)     # batch id per sublane
    lane_b = jax.lax.broadcasted_iota(jnp.int32, (P, Bp), 1)    # batch id per lane
    pos_col = jnp.full((Bp, 1), -1, jnp.int32)                  # pos_idx per batch row
    pidx_bc = jnp.full((P, Bp), -1, jnp.int32)                  # para_idx per batch col
    for b in range(B):                                          # B static & tiny
        pos_col = jnp.where(row_b == b, pos_ref[b], pos_col)
        pidx_bc = jnp.where(lane_b == b, pidx_ref[b], pidx_bc)
    p_iota = jax.lax.broadcasted_iota(jnp.int32, (P, Bp), 0)
    paraoh = (p_iota == pidx_bc).astype(jnp.float32)            # [P, Bp]

    # ---- fused Exp/Query tanh-RNN (exp lanes [0,64), qry lanes [64,128)) ----
    # Hoisted input projection: one wide MXU matmul over all timesteps.
    xp = (jnp.dot(x_ref[...], wxh_ref[...], preferred_element_type=jnp.float32)
          + brnn_ref[...])                                      # [T*Bp, 128] f32
    whh = whh_ref[...]                                          # hoisted weight load

    h = jnp.zeros((Bp, LW), jnp.float32)
    sel = jnp.zeros((Bp, LW), jnp.float32)                      # pos_idx-selected state
    for t in range(T):                                          # static unroll, serial chain
        pre = xp[t * Bp:(t + 1) * Bp, :] + jnp.dot(             # tile-aligned 8-row slice
            h.astype(jnp.bfloat16), whh, preferred_element_type=jnp.float32)
        h = jnp.tanh(pre)
        sel = sel + jnp.where(pos_col == t, h, 0.0)             # keep h only at t == pos_idx[b]

    # ---- para_encoder: batched projection + masked softmax attention ----
    proj = jnp.tanh(
        jnp.dot(paraf_ref[...], wp_ref[...], preferred_element_type=jnp.float32)
        + bp_ref[...])                                          # [P*Bp, 128]
    proj3 = proj.reshape(P, Bp, LW)                             # trailing dims = (8,128) tiles
    qp = jnp.dot(sel.astype(jnp.bfloat16), wq_ref[...],
                 preferred_element_type=jnp.float32)            # [Bp, 128] (query part only)

    scores = jnp.sum(proj3 * qp[None, :, :], axis=-1)           # [P, Bp]
    mask = mask_ref[...]
    scores = jnp.where(mask > 0.5, scores, jnp.float32(-1e9))
    m = jnp.max(scores, axis=0, keepdims=True)
    e = jnp.exp(scores - m) * mask
    denom = jnp.maximum(jnp.sum(e, axis=0, keepdims=True), jnp.float32(1e-9))
    attn = e / denom                                            # [P, Bp] masked softmax

    # para_encoded[p,b,:] = attn[p,b] * proj[p,b,:]; context = row para_idx[b]
    w = (attn * paraoh)[:, :, None]                             # [P, Bp, 1]
    ctx = jnp.sum(w * proj3, axis=0)                            # [Bp, 128]

    # ---- linearfc(concat(target_encoder_state, context)) as two matmuls ----
    out_ref[...] = (
        jnp.dot(sel.astype(jnp.bfloat16), w1_ref[...], preferred_element_type=jnp.float32)
        + jnp.dot(ctx.astype(jnp.bfloat16), w2_ref[...], preferred_element_type=jnp.float32)
        + bfc_ref[...])


# ----------------------------------------------------------------------------
# Parameter construction (unpadded, deterministic) and packing (padded, bf16)
# ----------------------------------------------------------------------------
def init_params(key, vocab, emb_dim, hidden, num_classes):
    ks = jax.random.split(key, 12)
    s = 0.1
    return {
        "emb":      jax.random.normal(ks[0], (vocab, emb_dim), jnp.float32) * s,
        "para_emb": jax.random.normal(ks[1], (vocab, emb_dim), jnp.float32) * s,
        # Exp_model RNN
        "exp_wxh": jax.random.normal(ks[2], (emb_dim, hidden), jnp.float32) * s,
        "exp_whh": jax.random.normal(ks[3], (hidden, hidden), jnp.float32) * s,
        "exp_b":   jnp.zeros((1, hidden), jnp.float32),
        # Query_model RNN
        "qry_wxh": jax.random.normal(ks[4], (emb_dim, hidden), jnp.float32) * s,
        "qry_whh": jax.random.normal(ks[5], (hidden, hidden), jnp.float32) * s,
        "qry_b":   jnp.zeros((1, hidden), jnp.float32),
        # para_encoder
        "wp": jax.random.normal(ks[6], (emb_dim, hidden), jnp.float32) * s,
        "wq": jax.random.normal(ks[7], (hidden, hidden), jnp.float32) * s,
        "bp": jnp.zeros((1, hidden), jnp.float32),
        # linearfc (concat split into two weight blocks)
        "w1": jax.random.normal(ks[8], (hidden, num_classes), jnp.float32) * s,
        "w2": jax.random.normal(ks[9], (hidden, num_classes), jnp.float32) * s,
        "bfc": jnp.zeros((1, num_classes), jnp.float32),
    }


def pack_params(p):
    """Fuse + zero-pad weights into lane-dense 128-wide bf16 blocks."""
    E = p["emb"].shape[1]
    H = p["exp_whh"].shape[0]
    C = p["w1"].shape[1]
    assert H <= HH and C <= CP

    wxh = jnp.zeros((E, LW), jnp.float32)
    wxh = wxh.at[:, :H].set(p["exp_wxh"]).at[:, HH:HH + H].set(p["qry_wxh"])
    whh = jnp.zeros((LW, LW), jnp.float32)
    whh = whh.at[:H, :H].set(p["exp_whh"]).at[HH:HH + H, HH:HH + H].set(p["qry_whh"])
    brnn = jnp.zeros((1, LW), jnp.float32)
    brnn = brnn.at[:, :H].set(p["exp_b"]).at[:, HH:HH + H].set(p["qry_b"])

    wp = jnp.zeros((E, LW), jnp.float32).at[:, :H].set(p["wp"])
    wq = jnp.zeros((LW, LW), jnp.float32).at[HH:HH + H, :H].set(p["wq"])
    bp = jnp.zeros((1, LW), jnp.float32).at[:, :H].set(p["bp"])

    w1fc = jnp.zeros((LW, CP), jnp.float32).at[:H, :C].set(p["w1"])
    w2fc = jnp.zeros((LW, CP), jnp.float32).at[:H, :C].set(p["w2"])
    bfc = jnp.zeros((1, CP), jnp.float32).at[:, :C].set(p["bfc"])

    return {
        "emb": p["emb"], "para_emb": p["para_emb"],
        "wxh": wxh.astype(jnp.bfloat16),
        "whh": whh.astype(jnp.bfloat16),
        "brnn": brnn,
        "wp": wp.astype(jnp.bfloat16),
        "wq": wq.astype(jnp.bfloat16),
        "bp": bp,
        "w1fc": w1fc.astype(jnp.bfloat16),
        "w2fc": w2fc.astype(jnp.bfloat16),
        "bfc": bfc,
    }


# ----------------------------------------------------------------------------
# Full forward pass (mirrors ModelSet.forward)
# ----------------------------------------------------------------------------
def model_set_forward(packed, example_pos, example_text, example_lengths,
                      pos_idx, paraset, paraset_attn, paraset_len_mask, para_idx,
                      *, num_classes):
    # example_pos / example_lengths unused by the reference forward; paraset_attn
    # only supplies the batch size there.
    del example_pos, example_lengths, paraset_attn
    B, T = example_text.shape
    P = paraset.shape[1]
    E = packed["emb"].shape[1]
    Bp = max(8, ((B + 7) // 8) * 8)          # sublane-aligned batch
    pad_b = Bp - B

    # Embedding gathers + layout prep (plain-JAX glue).
    emb = packed["emb"][example_text]                                    # [B, T, E]
    emb = jnp.pad(emb, ((0, pad_b), (0, 0), (0, 0)))                     # [Bp, T, E]
    x_flat = jnp.transpose(emb, (1, 0, 2)).reshape(T * Bp, E).astype(jnp.bfloat16)

    para_emb = packed["para_emb"][paraset]                               # [B, P, Lp, E]
    para_mean = jnp.mean(para_emb, axis=2)                               # [B, P, E]
    para_mean = jnp.pad(para_mean, ((0, pad_b), (0, 0), (0, 0)))         # [Bp, P, E]
    para_flat = jnp.transpose(para_mean, (1, 0, 2)).reshape(P * Bp, E).astype(jnp.bfloat16)

    mask_t = jnp.transpose(
        jnp.pad(paraset_len_mask.astype(jnp.float32), ((0, pad_b), (0, 0))))   # [P, Bp]

    pos_idx = pos_idx.astype(jnp.int32)
    para_idx = para_idx.astype(jnp.int32)

    tensor_args = (x_flat, mask_t, para_flat,
                   packed["wxh"], packed["whh"], packed["brnn"],
                   packed["wp"], packed["wq"], packed["bp"],
                   packed["w1fc"], packed["w2fc"], packed["bfc"])

    grid_spec = pltpu.PrefetchScalarGridSpec(
        num_scalar_prefetch=2,
        grid=(1,),
        in_specs=[_full_spec(a.shape) for a in tensor_args],
        out_specs=pl.BlockSpec((Bp, CP), lambda i, *prefetch: (0, 0)),
    )

    logits_padded = pl.pallas_call(
        fused_forward_kernel,
        out_shape=jax.ShapeDtypeStruct((Bp, CP), jnp.float32),
        grid_spec=grid_spec,
        compiler_params=pltpu.CompilerParams(dimension_semantics=("arbitrary",)),
    )(pos_idx, para_idx, *tensor_args)

    return logits_padded[:B, :num_classes]                               # [B, C]


if __name__ == "__main__":
    B, T, V, E, H, P, Lp, C = 2, 8, 50, 16, 32, 4, 6, 5

    key = jax.random.PRNGKey(0)
    kp, k1, k2, k3, k4, k5, k6 = jax.random.split(key, 7)

    params = init_params(kp, V, E, H, C)
    packed = pack_params(params)

    example_text = jax.random.randint(k1, (B, T), 0, V, dtype=jnp.int32)
    example_pos = jax.random.randint(k2, (B, T), 0, 4, dtype=jnp.int32)     # unused by forward
    example_lengths = jnp.full((B,), T, dtype=jnp.int32)                    # unused by forward
    pos_idx = jax.random.randint(k3, (B,), 0, T, dtype=jnp.int32)
    paraset = jax.random.randint(k4, (B, P, Lp), 0, V, dtype=jnp.int32)
    paraset_attn = jax.random.normal(k5, (B, P), jnp.float32)               # only supplies B
    paraset_len_mask = jnp.array([[1, 1, 1, 0], [1, 1, 0, 0]], jnp.float32)
    para_idx = jax.random.randint(k6, (B,), 0, 2, dtype=jnp.int32)

    fwd = jax.jit(functools.partial(model_set_forward, num_classes=C))
    out = fwd(packed, example_pos, example_text, example_lengths,
              pos_idx, paraset, paraset_attn, paraset_len_mask, para_idx)
    out = jax.block_until_ready(out)

    assert out.shape == (B, C) and out.dtype == jnp.float32
    assert bool(jnp.all(jnp.isfinite(out)))
    print("KERNEL_OK")
</pallas_src>

<mosaic_0001>
module attributes {stable_mosaic.version = 11 : i64} {
  func.func @fused_forward_kernel(%arg0: i32, %arg1: memref<2xi32, #tpu.memory_space<smem>>, %arg2: memref<2xi32, #tpu.memory_space<smem>>, %arg3: memref<64x16xbf16, #tpu.memory_space<vmem>>, %arg4: memref<4x8xf32, #tpu.memory_space<vmem>>, %arg5: memref<32x16xbf16, #tpu.memory_space<vmem>>, %arg6: memref<16x128xbf16, #tpu.memory_space<vmem>>, %arg7: memref<128x128xbf16, #tpu.memory_space<vmem>>, %arg8: memref<1x128xf32, #tpu.memory_space<vmem>>, %arg9: memref<16x128xbf16, #tpu.memory_space<vmem>>, %arg10: memref<128x128xbf16, #tpu.memory_space<vmem>>, %arg11: memref<1x128xf32, #tpu.memory_space<vmem>>, %arg12: memref<128x128xbf16, #tpu.memory_space<vmem>>, %arg13: memref<128x128xbf16, #tpu.memory_space<vmem>>, %arg14: memref<1x128xf32, #tpu.memory_space<vmem>>, %arg15: memref<8x128xf32, #tpu.memory_space<vmem>>) attributes {dimension_semantics = [#tpu.dimension_semantics<arbitrary>], iteration_bounds = array<i64: 1>, scalar_prefetch = 2 : i64, scratch_operands = 0 : i64, tpu.core_type = #tpu.core_type<tc>, window_params = [{pipeline_mode = #tpu.pipeline_mode<synchronous>, transform_indices = @transform_0, window_bounds = array<i64: 64, 16>}, {pipeline_mode = #tpu.pipeline_mode<synchronous>, transform_indices = @transform_1, window_bounds = array<i64: 4, 8>}, {pipeline_mode = #tpu.pipeline_mode<synchronous>, transform_indices = @transform_2, window_bounds = array<i64: 32, 16>}, {pipeline_mode = #tpu.pipeline_mode<synchronous>, transform_indices = @transform_3, window_bounds = array<i64: 16, 128>}, {pipeline_mode = #tpu.pipeline_mode<synchronous>, transform_indices = @transform_4, window_bounds = array<i64: 128, 128>}, {pipeline_mode = #tpu.pipeline_mode<synchronous>, transform_indices = @transform_5, window_bounds = array<i64: 1, 128>}, {pipeline_mode = #tpu.pipeline_mode<synchronous>, transform_indices = @transform_6, window_bounds = array<i64: 16, 128>}, {pipeline_mode = #tpu.pipeline_mode<synchronous>, transform_indices = @transform_7, window_bounds = array<i64: 128, 128>}, {pipeline_mode = #tpu.pipeline_mode<synchronous>, transform_indices = @transform_8, window_bounds = array<i64: 1, 128>}, {pipeline_mode = #tpu.pipeline_mode<synchronous>, transform_indices = @transform_9, window_bounds = array<i64: 128, 128>}, {pipeline_mode = #tpu.pipeline_mode<synchronous>, transform_indices = @transform_10, window_bounds = array<i64: 128, 128>}, {pipeline_mode = #tpu.pipeline_mode<synchronous>, transform_indices = @transform_11, window_bounds = array<i64: 1, 128>}, {pipeline_mode = #tpu.pipeline_mode<synchronous>, transform_indices = @transform_12, window_bounds = array<i64: 8, 128>}]} {
    %0 = tpu.iota {dimensions = array<i32: 0>} : vector<8x1xi32>
    %1 = tpu.iota {dimensions = array<i32: 1>} : vector<4x8xi32>
    %c-1_i32 = arith.constant -1 : i32
    %2 = vector.broadcast %c-1_i32 : i32 to vector<8x1xi32>
    %c-1_i32_0 = arith.constant -1 : i32
    %3 = vector.broadcast %c-1_i32_0 : i32 to vector<4x8xi32>
    %c0_i32 = arith.constant 0 : i32
    %4 = vector.broadcast %c0_i32 : i32 to vector<8x1xi32>
    %5 = arith.cmpi eq, %0, %4 : vector<8x1xi32>
    %c0 = arith.constant 0 : index
    %6 = memref.load %arg1[%c0] : memref<2xi32, #tpu.memory_space<smem>>
    %7 = vector.broadcast %6 : i32 to vector<8x1xi32>
    %8 = arith.select %5, %7, %2 : vector<8x1xi1>, vector<8x1xi32>
    %c0_i32_1 = arith.constant 0 : i32
    %9 = vector.broadcast %c0_i32_1 : i32 to vector<4x8xi32>
    %10 = arith.cmpi eq, %1, %9 : vector<4x8xi32>
    %c0_2 = arith.constant 0 : index
    %11 = memref.load %arg2[%c0_2] : memref<2xi32, #tpu.memory_space<smem>>
    %12 = vector.broadcast %11 : i32 to vector<4x8xi32>
    %13 = arith.select %10, %12, %3 : vector<4x8xi1>, vector<4x8xi32>
    %c1_i32 = arith.constant 1 : i32
    %14 = vector.broadcast %c1_i32 : i32 to vector<8x1xi32>
    %15 = arith.cmpi eq, %0, %14 : vector<8x1xi32>
    %c1 = arith.constant 1 : index
    %16 = memref.load %arg1[%c1] : memref<2xi32, #tpu.memory_space<smem>>
    %17 = vector.broadcast %16 : i32 to vector<8x1xi32>
    %18 = arith.select %15, %17, %8 : vector<8x1xi1>, vector<8x1xi32>
    %c1_i32_3 = arith.constant 1 : i32
    %19 = vector.broadcast %c1_i32_3 : i32 to vector<4x8xi32>
    %20 = arith.cmpi eq, %1, %19 : vector<4x8xi32>
    %c1_4 = arith.constant 1 : index
    %21 = memref.load %arg2[%c1_4] : memref<2xi32, #tpu.memory_space<smem>>
    %22 = vector.broadcast %21 : i32 to vector<4x8xi32>
    %23 = arith.select %20, %22, %13 : vector<4x8xi1>, vector<4x8xi32>
    %24 = tpu.iota {dimensions = array<i32: 0>} : vector<4x8xi32>
    %25 = arith.cmpi eq, %24, %23 : vector<4x8xi32>
    %26 = arith.extui %25 : vector<4x8xi1> to vector<4x8xi32>
    %27 = arith.sitofp %26 : vector<4x8xi32> to vector<4x8xf32>
    %c0_5 = arith.constant 0 : index
    %c0_6 = arith.constant 0 : index
    %28 = vector.load %arg3[%c0_5, %c0_6] : memref<64x16xbf16, #tpu.memory_space<vmem>>, vector<64x16xbf16>
    %c0_7 = arith.constant 0 : index
    %c0_8 = arith.constant 0 : index
    %29 = vector.load %arg6[%c0_7, %c0_8] : memref<16x128xbf16, #tpu.memory_space<vmem>>, vector<16x128xbf16>
    %cst = arith.constant dense<0.000000e+00> : vector<64x128xf32>
    %30 = tpu.matmul %28, %29, %cst {dimension_numbers = #tpu.dot_dimension_numbers<[1], [0], [0], [1], [0, 0, 1, 1], [], []>} : vector<64x16xbf16>, vector<16x128xbf16>, vector<64x128xf32> -> vector<64x128xf32>
    %c0_9 = arith.constant 0 : index
    %c0_10 = arith.constant 0 : index
    %31 = vector.load %arg8[%c0_9, %c0_10] : memref<1x128xf32, #tpu.memory_space<vmem>>, vector<1x128xf32>
    %32 = vector.broadcast %31 : vector<1x128xf32> to vector<64x128xf32>
    %33 = arith.addf %30, %32 : vector<64x128xf32>
    %c0_11 = arith.constant 0 : index
    %c0_12 = arith.constant 0 : index
    %34 = vector.load %arg7[%c0_11, %c0_12] : memref<128x128xbf16, #tpu.memory_space<vmem>>, vector<128x128xbf16>
    %cst_13 = arith.constant 0.000000e+00 : f32
    %35 = vector.broadcast %cst_13 : f32 to vector<8x128xf32>
    %cst_14 = arith.constant 0.000000e+00 : f32
    %36 = vector.broadcast %cst_14 : f32 to vector<8x128xf32>
    %37 = vector.extract_strided_slice %33 {offsets = [0, 0], sizes = [8, 128], strides = [1, 1]} : vector<64x128xf32> to vector<8x128xf32>
    %38 = arith.truncf %35 : vector<8x128xf32> to vector<8x128xbf16>
    %cst_15 = arith.constant dense<0.000000e+00> : vector<8x128xf32>
    %39 = tpu.matmul %38, %34, %cst_15 {dimension_numbers = #tpu.dot_dimension_numbers<[1], [0], [0], [1], [0, 0, 1, 1], [], []>} : vector<8x128xbf16>, vector<128x128xbf16>, vector<8x128xf32> -> vector<8x128xf32>
    %40 = arith.addf %37, %39 : vector<8x128xf32>
    %41 = math.tanh %40 : vector<8x128xf32>
    %c0_i32_16 = arith.constant 0 : i32
    %42 = vector.broadcast %c0_i32_16 : i32 to vector<8x1xi32>
    %43 = arith.cmpi eq, %18, %42 : vector<8x1xi32>
    %cst_17 = arith.constant 0.000000e+00 : f32
    %44 = vector.shape_cast %43 : vector<8x1xi1> to vector<8x1xi1>
    %45 = vector.broadcast %44 : vector<8x1xi1> to vector<8x128xi1>
    %46 = vector.broadcast %cst_17 : f32 to vector<8x128xf32>
    %47 = arith.select %45, %41, %46 : vector<8x128xi1>, vector<8x128xf32>
    %48 = arith.addf %36, %47 : vector<8x128xf32>
    %49 = vector.extract_strided_slice %33 {offsets = [8, 0], sizes = [8, 128], strides = [1, 1]} : vector<64x128xf32> to vector<8x128xf32>
    %50 = arith.truncf %41 : vector<8x128xf32> to vector<8x128xbf16>
    %cst_18 = arith.constant dense<0.000000e+00> : vector<8x128xf32>
    %51 = tpu.matmul %50, %34, %cst_18 {dimension_numbers = #tpu.dot_dimension_numbers<[1], [0], [0], [1], [0, 0, 1, 1], [], []>} : vector<8x128xbf16>, vector<128x128xbf16>, vector<8x128xf32> -> vector<8x128xf32>
    %52 = arith.addf %49, %51 : vector<8x128xf32>
    %53 = math.tanh %52 : vector<8x128xf32>
    %c1_i32_19 = arith.constant 1 : i32
    %54 = vector.broadcast %c1_i32_19 : i32 to vector<8x1xi32>
    %55 = arith.cmpi eq, %18, %54 : vector<8x1xi32>
    %cst_20 = arith.constant 0.000000e+00 : f32
    %56 = vector.shape_cast %55 : vector<8x1xi1> to vector<8x1xi1>
    %57 = vector.broadcast %56 : vector<8x1xi1> to vector<8x128xi1>
    %58 = vector.broadcast %cst_20 : f32 to vector<8x128xf32>
    %59 = arith.select %57, %53, %58 : vector<8x128xi1>, vector<8x128xf32>
    %60 = arith.addf %48, %59 : vector<8x128xf32>
    %61 = vector.extract_strided_slice %33 {offsets = [16, 0], sizes = [8, 128], strides = [1, 1]} : vector<64x128xf32> to vector<8x128xf32>
    %62 = arith.truncf %53 : vector<8x128xf32> to vector<8x128xbf16>
    %cst_21 = arith.constant dense<0.000000e+00> : vector<8x128xf32>
    %63 = tpu.matmul %62, %34, %cst_21 {dimension_numbers = #tpu.dot_dimension_numbers<[1], [0], [0], [1], [0, 0, 1, 1], [], []>} : vector<8x128xbf16>, vector<128x128xbf16>, vector<8x128xf32> -> vector<8x128xf32>
    %64 = arith.addf %61, %63 : vector<8x128xf32>
    %65 = math.tanh %64 : vector<8x128xf32>
    %c2_i32 = arith.constant 2 : i32
    %66 = vector.broadcast %c2_i32 : i32 to vector<8x1xi32>
    %67 = arith.cmpi eq, %18, %66 : vector<8x1xi32>
    %cst_22 = arith.constant 0.000000e+00 : f32
    %68 = vector.shape_cast %67 : vector<8x1xi1> to vector<8x1xi1>
    %69 = vector.broadcast %68 : vector<8x1xi1> to vector<8x128xi1>
    %70 = vector.broadcast %cst_22 : f32 to vector<8x128xf32>
    %71 = arith.select %69, %65, %70 : vector<8x128xi1>, vector<8x128xf32>
    %72 = arith.addf %60, %71 : vector<8x128xf32>
    %73 = vector.extract_strided_slice %33 {offsets = [24, 0], sizes = [8, 128], strides = [1, 1]} : vector<64x128xf32> to vector<8x128xf32>
    %74 = arith.truncf %65 : vector<8x128xf32> to vector<8x128xbf16>
    %cst_23 = arith.constant dense<0.000000e+00> : vector<8x128xf32>
    %75 = tpu.matmul %74, %34, %cst_23 {dimension_numbers = #tpu.dot_dimension_numbers<[1], [0], [0], [1], [0, 0, 1, 1], [], []>} : vector<8x128xbf16>, vector<128x128xbf16>, vector<8x128xf32> -> vector<8x128xf32>
    %76 = arith.addf %73, %75 : vector<8x128xf32>
    %77 = math.tanh %76 : vector<8x128xf32>
    %c3_i32 = arith.constant 3 : i32
    %78 = vector.broadcast %c3_i32 : i32 to vector<8x1xi32>
    %79 = arith.cmpi eq, %18, %78 : vector<8x1xi32>
    %cst_24 = arith.constant 0.000000e+00 : f32
    %80 = vector.shape_cast %79 : vector<8x1xi1> to vector<8x1xi1>
    %81 = vector.broadcast %80 : vector<8x1xi1> to vector<8x128xi1>
    %82 = vector.broadcast %cst_24 : f32 to vector<8x128xf32>
    %83 = arith.select %81, %77, %82 : vector<8x128xi1>, vector<8x128xf32>
    %84 = arith.addf %72, %83 : vector<8x128xf32>
    %85 = vector.extract_strided_slice %33 {offsets = [32, 0], sizes = [8, 128], strides = [1, 1]} : vector<64x128xf32> to vector<8x128xf32>
    %86 = arith.truncf %77 : vector<8x128xf32> to vector<8x128xbf16>
    %cst_25 = arith.constant dense<0.000000e+00> : vector<8x128xf32>
    %87 = tpu.matmul %86, %34, %cst_25 {dimension_numbers = #tpu.dot_dimension_numbers<[1], [0], [0], [1], [0, 0, 1, 1], [], []>} : vector<8x128xbf16>, vector<128x128xbf16>, vector<8x128xf32> -> vector<8x128xf32>
    %88 = arith.addf %85, %87 : vector<8x128xf32>
    %89 = math.tanh %88 : vector<8x128xf32>
    %c4_i32 = arith.constant 4 : i32
    %90 = vector.broadcast %c4_i32 : i32 to vector<8x1xi32>
    %91 = arith.cmpi eq, %18, %90 : vector<8x1xi32>
    %cst_26 = arith.constant 0.000000e+00 : f32
    %92 = vector.shape_cast %91 : vector<8x1xi1> to vector<8x1xi1>
    %93 = vector.broadcast %92 : vector<8x1xi1> to vector<8x128xi1>
    %94 = vector.broadcast %cst_26 : f32 to vector<8x128xf32>
    %95 = arith.select %93, %89, %94 : vector<8x128xi1>, vector<8x128xf32>
    %96 = arith.addf %84, %95 : vector<8x128xf32>
    %97 = vector.extract_strided_slice %33 {offsets = [40, 0], sizes = [8, 128], strides = [1, 1]} : vector<64x128xf32> to vector<8x128xf32>
    %98 = arith.truncf %89 : vector<8x128xf32> to vector<8x128xbf16>
    %cst_27 = arith.constant dense<0.000000e+00> : vector<8x128xf32>
    %99 = tpu.matmul %98, %34, %cst_27 {dimension_numbers = #tpu.dot_dimension_numbers<[1], [0], [0], [1], [0, 0, 1, 1], [], []>} : vector<8x128xbf16>, vector<128x128xbf16>, vector<8x128xf32> -> vector<8x128xf32>
    %100 = arith.addf %97, %99 : vector<8x128xf32>
    %101 = math.tanh %100 : vector<8x128xf32>
    %c5_i32 = arith.constant 5 : i32
    %102 = vector.broadcast %c5_i32 : i32 to vector<8x1xi32>
    %103 = arith.cmpi eq, %18, %102 : vector<8x1xi32>
    %cst_28 = arith.constant 0.000000e+00 : f32
    %104 = vector.shape_cast %103 : vector<8x1xi1> to vector<8x1xi1>
    %105 = vector.broadcast %104 : vector<8x1xi1> to vector<8x128xi1>
    %106 = vector.broadcast %cst_28 : f32 to vector<8x128xf32>
    %107 = arith.select %105, %101, %106 : vector<8x128xi1>, vector<8x128xf32>
    %108 = arith.addf %96, %107 : vector<8x128xf32>
    %109 = vector.extract_strided_slice %33 {offsets = [48, 0], sizes = [8, 128], strides = [1, 1]} : vector<64x128xf32> to vector<8x128xf32>
    %110 = arith.truncf %101 : vector<8x128xf32> to vector<8x128xbf16>
    %cst_29 = arith.constant dense<0.000000e+00> : vector<8x128xf32>
    %111 = tpu.matmul %110, %34, %cst_29 {dimension_numbers = #tpu.dot_dimension_numbers<[1], [0], [0], [1], [0, 0, 1, 1], [], []>} : vector<8x128xbf16>, vector<128x128xbf16>, vector<8x128xf32> -> vector<8x128xf32>
    %112 = arith.addf %109, %111 : vector<8x128xf32>
    %113 = math.tanh %112 : vector<8x128xf32>
    %c6_i32 = arith.constant 6 : i32
    %114 = vector.broadcast %c6_i32 : i32 to vector<8x1xi32>
    %115 = arith.cmpi eq, %18, %114 : vector<8x1xi32>
    %cst_30 = arith.constant 0.000000e+00 : f32
    %116 = vector.shape_cast %115 : vector<8x1xi1> to vector<8x1xi1>
    %117 = vector.broadcast %116 : vector<8x1xi1> to vector<8x128xi1>
    %118 = vector.broadcast %cst_30 : f32 to vector<8x128xf32>
    %119 = arith.select %117, %113, %118 : vector<8x128xi1>, vector<8x128xf32>
    %120 = arith.addf %108, %119 : vector<8x128xf32>
    %121 = vector.extract_strided_slice %33 {offsets = [56, 0], sizes = [8, 128], strides = [1, 1]} : vector<64x128xf32> to vector<8x128xf32>
    %122 = arith.truncf %113 : vector<8x128xf32> to vector<8x128xbf16>
    %cst_31 = arith.constant dense<0.000000e+00> : vector<8x128xf32>
    %123 = tpu.matmul %122, %34, %cst_31 {dimension_numbers = #tpu.dot_dimension_numbers<[1], [0], [0], [1], [0, 0, 1, 1], [], []>} : vector<8x128xbf16>, vector<128x128xbf16>, vector<8x128xf32> -> vector<8x128xf32>
    %124 = arith.addf %121, %123 : vector<8x128xf32>
    %125 = math.tanh %124 : vector<8x128xf32>
    %c7_i32 = arith.constant 7 : i32
    %126 = vector.broadcast %c7_i32 : i32 to vector<8x1xi32>
    %127 = arith.cmpi eq, %18, %126 : vector<8x1xi32>
    %cst_32 = arith.constant 0.000000e+00 : f32
    %128 = vector.shape_cast %127 : vector<8x1xi1> to vector<8x1xi1>
    %129 = vector.broadcast %128 : vector<8x1xi1> to vector<8x128xi1>
    %130 = vector.broadcast %cst_32 : f32 to vector<8x128xf32>
    %131 = arith.select %129, %125, %130 : vector<8x128xi1>, vector<8x128xf32>
    %132 = arith.addf %120, %131 : vector<8x128xf32>
    %c0_33 = arith.constant 0 : index
    %c0_34 = arith.constant 0 : index
    %133 = vector.load %arg5[%c0_33, %c0_34] : memref<32x16xbf16, #tpu.memory_space<vmem>>, vector<32x16xbf16>
    %c0_35 = arith.constant 0 : index
    %c0_36 = arith.constant 0 : index
    %134 = vector.load %arg9[%c0_35, %c0_36] : memref<16x128xbf16, #tpu.memory_space<vmem>>, vector<16x128xbf16>
    %cst_37 = arith.constant dense<0.000000e+00> : vector<32x128xf32>
    %135 = tpu.matmul %133, %134, %cst_37 {dimension_numbers = #tpu.dot_dimension_numbers<[1], [0], [0], [1], [0, 0, 1, 1], [], []>} : vector<32x16xbf16>, vector<16x128xbf16>, vector<32x128xf32> -> vector<32x128xf32>
    %c0_38 = arith.constant 0 : index
    %c0_39 = arith.constant 0 : index
    %136 = vector.load %arg11[%c0_38, %c0_39] : memref<1x128xf32, #tpu.memory_space<vmem>>, vector<1x128xf32>
    %137 = vector.broadcast %136 : vector<1x128xf32> to vector<32x128xf32>
    %138 = arith.addf %135, %137 : vector<32x128xf32>
    %139 = math.tanh %138 : vector<32x128xf32>
    %140 = vector.shape_cast %139 : vector<32x128xf32> to vector<4x8x128xf32>
    %141 = arith.truncf %132 : vector<8x128xf32> to vector<8x128xbf16>
    %c0_40 = arith.constant 0 : index
    %c0_41 = arith.constant 0 : index
    %142 = vector.load %arg10[%c0_40, %c0_41] : memref<128x128xbf16, #tpu.memory_space<vmem>>, vector<128x128xbf16>
    %cst_42 = arith.constant dense<0.000000e+00> : vector<8x128xf32>
    %143 = tpu.matmul %141, %142, %cst_42 {dimension_numbers = #tpu.dot_dimension_numbers<[1], [0], [0], [1], [0, 0, 1, 1], [], []>} : vector<8x128xbf16>, vector<128x128xbf16>, vector<8x128xf32> -> vector<8x128xf32>
    %144 = vector.shape_cast %143 : vector<8x128xf32> to vector<1x8x128xf32>
    %145 = vector.broadcast %144 : vector<1x8x128xf32> to vector<4x8x128xf32>
    %146 = arith.mulf %140, %145 : vector<4x8x128xf32>
    %cst_43 = arith.constant dense<0.000000e+00> : vector<4x8xf32>
    %147 = vector.multi_reduction <add>, %146, %cst_43 [2] : vector<4x8x128xf32> to vector<4x8xf32>
    %c0_44 = arith.constant 0 : index
    %c0_45 = arith.constant 0 : index
    %148 = vector.load %arg4[%c0_44, %c0_45] : memref<4x8xf32, #tpu.memory_space<vmem>>, vector<4x8xf32>
    %cst_46 = arith.constant 5.000000e-01 : f32
    %149 = vector.broadcast %cst_46 : f32 to vector<4x8xf32>
    %150 = arith.cmpf ogt, %148, %149 : vector<4x8xf32>
    %cst_47 = arith.constant -1.000000e+09 : f32
    %151 = vector.broadcast %cst_47 : f32 to vector<4x8xf32>
    %152 = arith.select %150, %147, %151 : vector<4x8xi1>, vector<4x8xf32>
    %cst_48 = arith.constant dense<0xFF800000> : vector<8xf32>
    %153 = vector.multi_reduction <maximumf>, %152, %cst_48 [0] : vector<4x8xf32> to vector<8xf32>
    %154 = vector.shape_cast %153 : vector<8xf32> to vector<1x8xf32>
    %155 = vector.broadcast %154 : vector<1x8xf32> to vector<4x8xf32>
    %156 = arith.subf %152, %155 : vector<4x8xf32>
    %157 = math.exp %156 : vector<4x8xf32>
    %158 = arith.mulf %157, %148 : vector<4x8xf32>
    %cst_49 = arith.constant dense<0.000000e+00> : vector<8xf32>
    %159 = vector.multi_reduction <add>, %158, %cst_49 [0] : vector<4x8xf32> to vector<8xf32>
    %160 = vector.shape_cast %159 : vector<8xf32> to vector<1x8xf32>
    %cst_50 = arith.constant 9.99999971E-10 : f32
    %161 = vector.broadcast %cst_50 : f32 to vector<1x8xf32>
    %162 = arith.maximumf %160, %161 : vector<1x8xf32>
    %163 = vector.broadcast %162 : vector<1x8xf32> to vector<4x8xf32>
    %164 = arith.divf %158, %163 : vector<4x8xf32>
    %165 = arith.mulf %164, %27 : vector<4x8xf32>
    %166 = vector.shape_cast %165 : vector<4x8xf32> to vector<4x8x1xf32>
    %167 = vector.broadcast %166 : vector<4x8x1xf32> to vector<4x8x128xf32>
    %168 = arith.mulf %167, %140 : vector<4x8x128xf32>
    %cst_51 = arith.constant dense<0.000000e+00> : vector<8x128xf32>
    %169 = vector.multi_reduction <add>, %168, %cst_51 [0] : vector<4x8x128xf32> to vector<8x128xf32>
    %170 = arith.truncf %132 : vector<8x128xf32> to vector<8x128xbf16>
    %c0_52 = arith.constant 0 : index
    %c0_53 = arith.constant 0 : index
    %171 = vector.load %arg12[%c0_52, %c0_53] : memref<128x128xbf16, #tpu.memory_space<vmem>>, vector<128x128xbf16>
    %cst_54 = arith.constant dense<0.000000e+00> : vector<8x128xf32>
    %172 = tpu.matmul %170, %171, %cst_54 {dimension_numbers = #tpu.dot_dimension_numbers<[1], [0], [0], [1], [0, 0, 1, 1], [], []>} : vector<8x128xbf16>, vector<128x128xbf16>, vector<8x128xf32> -> vector<8x128xf32>
    %173 = arith.truncf %169 : vector<8x128xf32> to vector<8x128xbf16>
    %c0_55 = arith.constant 0 : index
    %c0_56 = arith.constant 0 : index
    %174 = vector.load %arg13[%c0_55, %c0_56] : memref<128x128xbf16, #tpu.memory_space<vmem>>, vector<128x128xbf16>
    %cst_57 = arith.constant dense<0.000000e+00> : vector<8x128xf32>
    %175 = tpu.matmul %173, %174, %cst_57 {dimension_numbers = #tpu.dot_dimension_numbers<[1], [0], [0], [1], [0, 0, 1, 1], [], []>} : vector<8x128xbf16>, vector<128x128xbf16>, vector<8x128xf32> -> vector<8x128xf32>
    %176 = arith.addf %172, %175 : vector<8x128xf32>
    %c0_58 = arith.constant 0 : index
    %c0_59 = arith.constant 0 : index
    %177 = vector.load %arg14[%c0_58, %c0_59] : memref<1x128xf32, #tpu.memory_space<vmem>>, vector<1x128xf32>
    %178 = vector.broadcast %177 : vector<1x128xf32> to vector<8x128xf32>
    %179 = arith.addf %176, %178 : vector<8x128xf32>
    %c0_60 = arith.constant 0 : index
    %c0_61 = arith.constant 0 : index
    %180 = vector.load %arg15[%c0_60, %c0_61] : memref<8x128xf32, #tpu.memory_space<vmem>>, vector<8x128xf32>
    tpu.vector_store %arg15[%c0_60, %c0_61], %179 {strides = array<i32>} : memref<8x128xf32, #tpu.memory_space<vmem>>, vector<8x128xf32>,
    return
  }
  func.func @transform_0(%arg0: i32, %arg1: memref<2xi32, #tpu.memory_space<smem>>, %arg2: memref<2xi32, #tpu.memory_space<smem>>) -> (i32, i32) {
    %c0_i32 = arith.constant 0 : i32
    %c0_i32_0 = arith.constant 0 : i32
    %c0_i32_1 = arith.constant 0 : i32
    return %c0_i32, %c0_i32_0 : i32, i32
  }
  func.func @transform_1(%arg0: i32, %arg1: memref<2xi32, #tpu.memory_space<smem>>, %arg2: memref<2xi32, #tpu.memory_space<smem>>) -> (i32, i32) {
    %c0_i32 = arith.constant 0 : i32
    %c0_i32_0 = arith.constant 0 : i32
    %c0_i32_1 = arith.constant 0 : i32
    return %c0_i32, %c0_i32_0 : i32, i32
  }
  func.func @transform_2(%arg0: i32, %arg1: memref<2xi32, #tpu.memory_space<smem>>, %arg2: memref<2xi32, #tpu.memory_space<smem>>) -> (i32, i32) {
    %c0_i32 = arith.constant 0 : i32
    %c0_i32_0 = arith.constant 0 : i32
    %c0_i32_1 = arith.constant 0 : i32
    return %c0_i32, %c0_i32_0 : i32, i32
  }
  func.func @transform_3(%arg0: i32, %arg1: memref<2xi32, #tpu.memory_space<smem>>, %arg2: memref<2xi32, #tpu.memory_space<smem>>) -> (i32, i32) {
    %c0_i32 = arith.constant 0 : i32
    %c0_i32_0 = arith.constant 0 : i32
    %c0_i32_1 = arith.constant 0 : i32
    return %c0_i32, %c0_i32_0 : i32, i32
  }
  func.func @transform_4(%arg0: i32, %arg1: memref<2xi32, #tpu.memory_space<smem>>, %arg2: memref<2xi32, #tpu.memory_space<smem>>) -> (i32, i32) {
    %c0_i32 = arith.constant 0 : i32
    %c0_i32_0 = arith.constant 0 : i32
    %c0_i32_1 = arith.constant 0 : i32
    return %c0_i32, %c0_i32_0 : i32, i32
  }
  func.func @transform_5(%arg0: i32, %arg1: memref<2xi32, #tpu.memory_space<smem>>, %arg2: memref<2xi32, #tpu.memory_space<smem>>) -> (i32, i32) {
    %c0_i32 = arith.constant 0 : i32
    %c0_i32_0 = arith.constant 0 : i32
    %c0_i32_1 = arith.constant 0 : i32
    return %c0_i32, %c0_i32_0 : i32, i32
  }
  func.func @transform_6(%arg0: i32, %arg1: memref<2xi32, #tpu.memory_space<smem>>, %arg2: memref<2xi32, #tpu.memory_space<smem>>) -> (i32, i32) {
    %c0_i32 = arith.constant 0 : i32
    %c0_i32_0 = arith.constant 0 : i32
    %c0_i32_1 = arith.constant 0 : i32
    return %c0_i32, %c0_i32_0 : i32, i32
  }
  func.func @transform_7(%arg0: i32, %arg1: memref<2xi32, #tpu.memory_space<smem>>, %arg2: memref<2xi32, #tpu.memory_space<smem>>) -> (i32, i32) {
    %c0_i32 = arith.constant 0 : i32
    %c0_i32_0 = arith.constant 0 : i32
    %c0_i32_1 = arith.constant 0 : i32
    return %c0_i32, %c0_i32_0 : i32, i32
  }
  func.func @transform_8(%arg0: i32, %arg1: memref<2xi32, #tpu.memory_space<smem>>, %arg2: memref<2xi32, #tpu.memory_space<smem>>) -> (i32, i32) {
    %c0_i32 = arith.constant 0 : i32
    %c0_i32_0 = arith.constant 0 : i32
    %c0_i32_1 = arith.constant 0 : i32
    return %c0_i32, %c0_i32_0 : i32, i32
  }
  func.func @transform_9(%arg0: i32, %arg1: memref<2xi32, #tpu.memory_space<smem>>, %arg2: memref<2xi32, #tpu.memory_space<smem>>) -> (i32, i32) {
    %c0_i32 = arith.constant 0 : i32
    %c0_i32_0 = arith.constant 0 : i32
    %c0_i32_1 = arith.constant 0 : i32
    return %c0_i32, %c0_i32_0 : i32, i32
  }
  func.func @transform_10(%arg0: i32, %arg1: memref<2xi32, #tpu.memory_space<smem>>, %arg2: memref<2xi32, #tpu.memory_space<smem>>) -> (i32, i32) {
    %c0_i32 = arith.constant 0 : i32
    %c0_i32_0 = arith.constant 0 : i32
    %c0_i32_1 = arith.constant 0 : i32
    return %c0_i32, %c0_i32_0 : i32, i32
  }
  func.func @transform_11(%arg0: i32, %arg1: memref<2xi32, #tpu.memory_space<smem>>, %arg2: memref<2xi32, #tpu.memory_space<smem>>) -> (i32, i32) {
    %c0_i32 = arith.constant 0 : i32
    %c0_i32_0 = arith.constant 0 : i32
    %c0_i32_1 = arith.constant 0 : i32
    return %c0_i32, %c0_i32_0 : i32, i32
  }
  func.func @transform_12(%arg0: i32, %arg1: memref<2xi32, #tpu.memory_space<smem>>, %arg2: memref<2xi32, #tpu.memory_space<smem>>) -> (i32, i32) {
    %c0_i32 = arith.constant 0 : i32
    %c0_i32_0 = arith.constant 0 : i32
    %c0_i32_1 = arith.constant 0 : i32
    return %c0_i32, %c0_i32_0 : i32, i32
  }
}

</mosaic_0001>

<bundles_post_ra>
// kernel: model_set_forward.1
= control target key start
LH: loop header
LB: loop body
LE: loop exit
PB: predicated region body
PF: predicated region fallthrough
CT: control target
= control target key end

     0   :  { %s2133_s0 = inlined_call_operand.vmem [shape: s32[2], index: 0, kind: input, shape index: {}]   ;;  %s2134_s2 = inlined_call_operand.vmem [shape: bf16[64,16], index: 2, kind: input, shape index: {}]   ;;  %s2135_s3 = inlined_call_operand.vmem [shape: f32[4,8], index: 3, kind: input, shape index: {}]   ;;  %s2136_s4 = inlined_call_operand.vmem [shape: bf16[32,16], index: 4, kind: input, shape index: {}]   ;;  %s2137_s5 = inlined_call_operand.vmem [shape: bf16[16,128], index: 5, kind: input, shape index: {}]   ;;  %s2138_s6 = inlined_call_operand.vmem [shape: bf16[128,128], index: 6, kind: input, shape index: {}]   ;;  %s2139_s7 = inlined_call_operand.vmem [shape: f32[1,128], index: 7, kind: input, shape index: {}]   ;;  %s2140_s8 = inlined_call_operand.vmem [shape: bf16[16,128], index: 8, kind: input, shape index: {}]   ;;  %s2141_s9 = inlined_call_operand.vmem [shape: bf16[128,128], index: 9, kind: input, shape index: {}]   ;;  %s2142_s10 = inlined_call_operand.vmem [shape: f32[1,128], index: 10, kind: input, shape index: {}]   ;;  %s2143_s11 = inlined_call_operand.vmem [shape: bf16[128,128], index: 11, kind: input, shape index: {}]   ;;  %s2144_s12 = inlined_call_operand.vmem [shape: bf16[128,128], index: 12, kind: input, shape index: {}]   ;;  %s2145_s13 = inlined_call_operand.vmem [shape: f32[1,128], index: 13, kind: input, shape index: {}]   ;;  %s2146_s14 = inlined_call_operand.vmem [shape: f32[8,128], index: 14, kind: output, shape index: {}]   ;;  %s2147_s1 = inlined_call_operand.vmem [shape: s32[2], index: 1, kind: input, shape index: {}]  }
   0x1   :  { %s19_s15 = sshll.u32 %s2133_s0, 4  ;;  %s23_s18 = sshll.u32 %s2147_s1, 4  ;;  %s20_s15 = int_to_ptr.vmem [resolvable:$true] %s19_s15  ;;  %s24_s18 = int_to_ptr.vmem [resolvable:$true] %s23_s18 }
   0x2   :  { %s1628_s19 = scalar_lea.vmem %s20_s15, 16  ;;  %p1633_p1 = scmp.lt.s32.totalorder %s20_s15, %s20_s15 }
   0x3   :  { %p1629_p0 = scmp.ne.s32.totalorder %s20_s15, %s1628_s19  ;;  %p1634_p2 = scmp.lt.s32.totalorder %s1628_s19, %s1628_s19 }
   0x5   :  { %p1635_p3 = por %p1634_p2, %p1633_p1 }
   0x7   :  { %p1636_p4 = pnand %p1635_p3, %p1629_p0 }
   0x9   :  { %1639 = shalt.err (!%p1636_p4)  }
   0xa   :  { %s1654_s20 = smov [#allocation3]   ;;  %s1640_s21 = scalar_lea.vmem %s24_s18, 16 }
   0xb   :  { %22 = dma.vmem_to_smem %s20_s15, 16, %s1654_s20, [#allocation2] }
   0xc   :  { %p1641_p5 = scmp.ne.s32.totalorder %s24_s18, %s1640_s21  ;;  %p1645_p6 = scmp.lt.s32.totalorder %s24_s18, %s24_s18 }
   0xd   :  { %p1646_p7 = scmp.lt.s32.totalorder %s1640_s21, %s1640_s21 }
   0xf   :  { %p1647_p8 = por %p1646_p7, %p1645_p6 }
  0x11   :  { %p1648_p9 = pnand %p1647_p8, %p1641_p5 }
  0x13   :  { %1651 = shalt.err (!%p1648_p9)  }
  0x14   :  { %s1655_s0 = smov [#allocation4]  }
  0x15   :  { %26 = dma.vmem_to_smem %s24_s18, 16, %s1655_s0, [#allocation2] }
  0x16   :  { %1652 = dma.done.wait [#allocation2], 32 }
  0x17   :  { %1653 = vsyncadd [#allocation2], 4294967264 }
  0x18   :  { %28 = sfence }
  0x19   :  { %v1560_v0 = vld [vmem:[%s2137_s5] sm:$0xff]   ;;  %vm120_vm0 = vcmask 130048   ;;  %v1562_v2 = vld [vmem:[%s2134_s2 + $0x8] sm:$0xff]   ;;  %v1656_v3 = vmov 0.0   ;;  %vm1657_vm1 = vmmov 0   ;;  %v1568_v6 = vld [vmem:[%s2134_s2 + $0x10] sm:$0xff]   ;;  %v54_v39 = vlaneseq }
  0x1a   :  { %v1561_v1 = vld [vmem:[%s2134_s2] sm:$0xff]   ;;  %1319 = vmatprep.subr.bf16.mxu1 %v1560_v0  ;;  %1349 = vmatprep.subr.bf16.mxu0 %v1656_v3  ;;  %v1766_v5 = vld [vmem:[%s2138_s6 + $0x8] sm:$0xff]   ;;  %v1569_v7 = vld [vmem:[%s2134_s2 + $0x18] sm:$0xff]   ;;  %v1658_v14 = vmov 0   ;;  %s1160_s28 = sld [smem:[#allocation3 + $0x1]]  ;;  %vm872_vm12 = vcmask 1041409  }
  0x1b   :  { %1320 = vmatpush3.bf16.msra.mxu1 %v1560_v0  ;;  %1321 = vmatprep.mubr.msk.bf16.mxu1 %vm120_vm0, %v1561_v1  ;;  %v1754_v4 = vld [vmem:[%s2138_s6] sm:$0xff]   ;;  %v1782_v8 = vld [vmem:[%s2138_s6 + $0x10] sm:$0xff]   ;;  %v1788_v9 = vld [vmem:[%s2138_s6 + $0x18] sm:$0xff]   ;;  %v1889_v40 = vshrl.u32 %v54_v39, 7  ;;  %vm874_vm13 = vcmask 1042434   ;;  %vm876_vm14 = vcmask 1043459  }
  0x1c   :  { %1329 = vmatprep.subr.bf16.mxu1 %v1656_v3  ;;  %1365 = vmatprep.mubr.msk.bf16.mxu0 %vm1657_vm1, %v1656_v3  ;;  %v1800_v10 = vld [vmem:[%s2138_s6 + $0x20] sm:$0xff]   ;;  %v1809_v11 = vld [vmem:[%s2138_s6 + $0x28] sm:$0xff]   ;;  %v1818_v12 = vld [vmem:[%s2138_s6 + $0x30] sm:$0xff]   ;;  %s1161_s5 = sld [smem:[#allocation4 + $0x1]] }
  0x1d   :  { %1350 = vmatpush3.bf16.msra.mxu0 %v1754_v4  ;;  %v1830_v13 = vld [vmem:[%s2138_s6 + $0x38] sm:$0xff]   ;;  %v1163_v15 = vld [vmem:[%s2139_s7] ss:$0 sm:$0xff]  ;;  %s59_s7 = sld [smem:[#allocation3]]  ;;  %vm58_vm2 = vcmp.eq.s32.totalorder %v1889_v40, 0  ;;  %vm66_vm3 = vcmp.eq.s32.totalorder %v1889_v40, 1 }
  0x1e   :  { %1322 = vmatmul.mubr.msk.bf16.vlgmr.msra.gmra.mrb[0].mxu1 %vm120_vm0, %v1562_v2  ;;  %1351 = vmatprep.subr.bf16.mxu0 %v1656_v3 }
  0x1f   :  { %1330 = vmatpush3.bf16.msra.mxu1 %v1754_v4  ;;  %1325 = vmatprep.mubr.msk.bf16.mxu1 %vm120_vm0, %v1568_v6 }
  0x20   :  { %1331 = vmatprep.subr.bf16.mxu1 %v1656_v3  ;;  %v68_v48 = vstv %s1160_s28 }
  0x21   :  { %1352 = vmatpush3.bf16.msra.mxu0 %v1766_v5 }
  0x22   :  { %1353 = vmatprep.subr.bf16.mxu0 %v1656_v3 }
  0x23   :  { %1332 = vmatpush3.bf16.msra.mxu1 %v1766_v5  ;;  %v60_v44 = vstv %s59_s7 }
  0x24   :  { %1333 = vmatprep.subr.bf16.mxu1 %v1656_v3  ;;  %v61_v47 = vsel %vm58_vm2, %v60_v44, 4294967295  ;;  %v1577_v44 = vld [vmem:[%s2141_s9 + $0x18] sm:$0xff]  }
  0x25   :  { %1354 = vmatpush3.bf16.msra.mxu0 %v1782_v8  ;;  %v1893_v49 = vsel %vm66_vm3, %v68_v48, %v61_v47  ;;  %v1580_v47 = vld [vmem:[%s2141_s9 + $0x20] sm:$0xff]   ;;  %v1581_v48 = vld [vmem:[%s2141_s9 + $0x28] sm:$0xff]  }
  0x26   :  { %1326 = vmatmul.mubr.msk.bf16.gmra.mrb[4].mxu1 %vm120_vm0, %v1569_v7  ;;  %1355 = vmatprep.subr.bf16.mxu0 %v1656_v3  ;;  %vm304_vm4 = vcmp.eq.s32.totalorder %v1893_v49, 0  ;;  %vm352_vm5 = vcmp.eq.s32.totalorder %v1893_v49, 1  ;;  %vm400_vm6 = vcmp.eq.s32.totalorder %v1893_v49, 2  ;;  %vm448_vm7 = vcmp.eq.s32.totalorder %v1893_v49, 3 }
  0x27   :  { %1334 = vmatpush3.bf16.msra.mxu1 %v1782_v8  ;;  %1345 = vmatprep.mubr.msk.bf16.mxu1 %vm1657_vm1, %v1656_v3  ;;  %vm496_vm8 = vcmp.eq.s32.totalorder %v1893_v49, 4  ;;  %vm544_vm9 = vcmp.eq.s32.totalorder %v1893_v49, 5  ;;  %vm592_vm10 = vcmp.eq.s32.totalorder %v1893_v49, 6  ;;  %vm640_vm11 = vcmp.eq.s32.totalorder %v1893_v49, 7  ;;  %v1586_v49 = vld [vmem:[%s2143_s11 + $0x10] sm:$0xff]  }
  0x28   :  { %1335 = vmatprep.subr.bf16.mxu1 %v1656_v3 }
  0x29   :  { %1356 = vmatpush3.bf16.msra.mxu0 %v1788_v9 }
  0x2a   :  { %1357 = vmatprep.subr.bf16.mxu0 %v1656_v3 }
  0x2b   :  { %1336 = vmatpush3.bf16.msra.mxu1 %v1788_v9 }
  0x2c   :  { %1337 = vmatprep.subr.bf16.mxu1 %v1656_v3 }
  0x2d   :  { %1358 = vmatpush3.bf16.msra.mxu0 %v1800_v10 }
  0x2e   :  { %1359 = vmatprep.subr.bf16.mxu0 %v1656_v3 }
  0x2f   :  { %1338 = vmatpush3.bf16.msra.mxu1 %v1800_v10 }
  0x30   :  { %1339 = vmatprep.subr.bf16.mxu1 %v1656_v3 }
  0x31   :  { %1360 = vmatpush3.bf16.msra.mxu0 %v1809_v11 }
  0x32   :  { %1361 = vmatprep.subr.bf16.mxu0 %v1656_v3 }
  0x33   :  { %1340 = vmatpush3.bf16.msra.mxu1 %v1809_v11 }
  0x34   :  { %1341 = vmatprep.subr.bf16.mxu1 %v1656_v3 }
  0x35   :  { %1362 = vmatpush3.bf16.msra.mxu0 %v1818_v12 }
  0x36   :  { %1363 = vmatprep.subr.bf16.mxu0 %v1656_v3 }
  0x37   :  { %1342 = vmatpush3.bf16.msra.mxu1 %v1818_v12 }
  0x38   :  { %1343 = vmatprep.subr.bf16.mxu1 %v1656_v3 }
  0x39   :  { %1364 = vmatpush3.bf16.msra.mxu0 %v1830_v13 }
  0x3a   :  { %1389 = vmatprep.subr.bf16.mxu0 %v1656_v3 }
  0x3b   :  { %1344 = vmatpush3.bf16.msra.mxu1 %v1830_v13 }
  0x3c   :  { %1369 = vmatprep.subr.bf16.mxu1 %v1656_v3 }
  0x3e   :  { %1346 = vmatmul.mubr.bf16.vlgmr.msra.gmra.mrb[8].mxu1 %v1658_v14 }
  0x3f   :  { %1370 = vmatpush3.bf16.msra.mxu1 %v1754_v4  ;;  %1385 = vmatprep.mubr.msk.bf16.mxu1 %vm1657_vm1, %v1656_v3 }
  0x40   :  { %1371 = vmatprep.subr.bf16.mxu1 %v1656_v3 }
  0x43   :  { %1372 = vmatpush3.bf16.msra.mxu1 %v1766_v5 }
  0x44   :  { %1373 = vmatprep.subr.bf16.mxu1 %v1656_v3 }
  0x47   :  { %1374 = vmatpush3.bf16.msra.mxu1 %v1782_v8 }
  0x48   :  { %1375 = vmatprep.subr.bf16.mxu1 %v1656_v3 }
  0x4b   :  { %1376 = vmatpush3.bf16.msra.mxu1 %v1788_v9 }
  0x4c   :  { %1377 = vmatprep.subr.bf16.mxu1 %v1656_v3 }
  0x4f   :  { %1378 = vmatpush3.bf16.msra.mxu1 %v1800_v10 }
  0x50   :  { %1379 = vmatprep.subr.bf16.mxu1 %v1656_v3 }
  0x53   :  { %1380 = vmatpush3.bf16.msra.mxu1 %v1809_v11 }
  0x54   :  { %1381 = vmatprep.subr.bf16.mxu1 %v1656_v3 }
  0x57   :  { %1382 = vmatpush3.bf16.msra.mxu1 %v1818_v12 }
  0x58   :  { %1383 = vmatprep.subr.bf16.mxu1 %v1656_v3 }
  0x5b   :  { %1384 = vmatpush3.bf16.msra.mxu1 %v1830_v13 }
  0x5c   :  { %1409 = vmatprep.subr.bf16.mxu1 %v1656_v3 }
  0xf1   :  { %v1323_v16 = vpop.f32.mrb[0].mxu1 }
  0xf2   :  { %v1858_v17 = vadd.f32 %v1323_v16, %v1163_v15  ;;  %v167_v18 = vpop.f32.mrb[1].mxu1 }
  0xf3   :  { %v1324_v19 = vpop.f32.mrb[2].mxu1  ;;  %v168_v31 = vadd.f32 %v1163_v15, %v167_v18 }
  0xf4   :  { %v1860_v20 = vadd.f32 %v1324_v19, %v1163_v15  ;;  %v170_v21 = vpop.f32.mrb[3].mxu1 }
  0xf5   :  { %v171_v22 = vadd.f32 %v1163_v15, %v170_v21 }
  0xf9   :  { %v1327_v23 = vpop.f32.mrb[4].mxu1 }
  0xfa   :  { %v1862_v24 = vadd.f32 %v1327_v23, %v1163_v15  ;;  %v183_v25 = vpop.f32.mrb[5].mxu1 }
  0xfb   :  { %v1864_v26 = vadd.f32 %v1163_v15, %v183_v25  ;;  %v1328_v27 = vpop.f32.mrb[6].mxu1 }
  0xfc   :  { %v1866_v28 = vadd.f32 %v1328_v27, %v1163_v15  ;;  %v186_v29 = vpop.f32.mrb[7].mxu1 }
  0xfd   :  { %v1868_v30 = vadd.f32 %v1163_v15, %v186_v29 }
 0x111   :  { %v296_v32 = vpop.f32.mrb[8].mxu1 }
 0x112   :  { %v302_v33 = vadd.f32 %v296_v32, %v168_v31  ;;  %v1347_v34 = vpop.f32.mrb[9].mxu1 }
 0x113   :  { %v299_v35 = vpop.f32.mrb[10].mxu1 }
 0x114   :  { %1600 = vtanh.f32 %v302_v33  ;;  %v1348_v36 = vpop.f32.mrb[11].mxu1 }
 0x11e   :  { %v1601_v37 = vpop.eup %1600 }
 0x11f   :  { %v309_v38 = vpack.c.bf16 %v1601_v37, %v1601_v37  ;;  %v307_v51 = vsel %vm304_vm4, %v1601_v37, 0.0  ;;  %v1573_v37 = vld [vmem:[%s2141_s9] sm:$0xff]  }
 0x121   :  { %1366 = vmatmul.mubr.bf16.vlgmr.msra.gmra.mrb[0].mxu0 %v309_v38 }
 0x122   :  { %1390 = vmatpush3.bf16.msra.mxu0 %v1754_v4  ;;  %1405 = vmatprep.mubr.msk.bf16.mxu0 %vm1657_vm1, %v1656_v3 }
 0x123   :  { %1391 = vmatprep.subr.bf16.mxu0 %v1656_v3 }
 0x126   :  { %1392 = vmatpush3.bf16.msra.mxu0 %v1766_v5 }
 0x127   :  { %1393 = vmatprep.subr.bf16.mxu0 %v1656_v3 }
 0x12a   :  { %1394 = vmatpush3.bf16.msra.mxu0 %v1782_v8 }
 0x12b   :  { %1395 = vmatprep.subr.bf16.mxu0 %v1656_v3 }
 0x12e   :  { %1396 = vmatpush3.bf16.msra.mxu0 %v1788_v9 }
 0x12f   :  { %1397 = vmatprep.subr.bf16.mxu0 %v1656_v3 }
 0x132   :  { %1398 = vmatpush3.bf16.msra.mxu0 %v1800_v10 }
 0x133   :  { %1399 = vmatprep.subr.bf16.mxu0 %v1656_v3 }
 0x136   :  { %1400 = vmatpush3.bf16.msra.mxu0 %v1809_v11 }
 0x137   :  { %1401 = vmatprep.subr.bf16.mxu0 %v1656_v3 }
 0x13a   :  { %1402 = vmatpush3.bf16.msra.mxu0 %v1818_v12 }
 0x13b   :  { %1403 = vmatprep.subr.bf16.mxu0 %v1656_v3 }
 0x13e   :  { %1404 = vmatpush3.bf16.msra.mxu0 %v1830_v13 }
 0x13f   :  { %1429 = vmatprep.subr.bf16.mxu0 %v1656_v3 }
 0x1f4   :  { %v344_v41 = vpop.f32.mrb[0].mxu0 }
 0x1f5   :  { %v350_v42 = vadd.f32 %v344_v41, %v171_v22  ;;  %v1367_v43 = vpop.f32.mrb[1].mxu0 }
 0x1f6   :  { %v347_v45 = vpop.f32.mrb[2].mxu0  ;;  %v1575_v43 = vld [vmem:[%s2141_s9 + $0x10] sm:$0xff]  }
 0x1f7   :  { %1602 = vtanh.f32 %v350_v42  ;;  %v1368_v46 = vpop.f32.mrb[3].mxu0  ;;  %v1578_v45 = vld [vmem:[%s2136_s4] sm:$0xff]  }
 0x1f8   :  { %v1579_v46 = vld [vmem:[%s2136_s4 + $0x8] sm:$0xff]  }
 0x201   :  { %v1603_v50 = vpop.eup %1602 }
 0x202   :  { %v355_v52 = vsel %vm352_vm5, %v1603_v50, 0.0  ;;  %v357_v53 = vpack.c.bf16 %v1603_v50, %v1603_v50  ;;  %v1582_v50 = vld [vmem:[%s2141_s9 + $0x30] sm:$0xff]  }
 0x203   :  { %v356_v54 = vadd.f32 %v355_v52, %v307_v51  ;;  %v1583_v51 = vld [vmem:[%s2141_s9 + $0x38] sm:$0xff]  }
 0x204   :  { %1386 = vmatmul.mubr.bf16.vlgmr.msra.gmra.mrb[12].mxu1 %v357_v53 }
 0x205   :  { %1410 = vmatpush3.bf16.msra.mxu1 %v1754_v4  ;;  %1425 = vmatprep.mubr.msk.bf16.mxu1 %vm1657_vm1, %v1656_v3 }
 0x206   :  { %1411 = vmatprep.subr.bf16.mxu1 %v1656_v3 }
 0x209   :  { %1412 = vmatpush3.bf16.msra.mxu1 %v1766_v5 }
 0x20a   :  { %1413 = vmatprep.subr.bf16.mxu1 %v1656_v3 }
 0x20d   :  { %1414 = vmatpush3.bf16.msra.mxu1 %v1782_v8 }
 0x20e   :  { %1415 = vmatprep.subr.bf16.mxu1 %v1656_v3 }
 0x211   :  { %1416 = vmatpush3.bf16.msra.mxu1 %v1788_v9 }
 0x212   :  { %1417 = vmatprep.subr.bf16.mxu1 %v1656_v3 }
 0x215   :  { %1418 = vmatpush3.bf16.msra.mxu1 %v1800_v10 }
 0x216   :  { %1419 = vmatprep.subr.bf16.mxu1 %v1656_v3 }
 0x219   :  { %1420 = vmatpush3.bf16.msra.mxu1 %v1809_v11 }
 0x21a   :  { %1421 = vmatprep.subr.bf16.mxu1 %v1656_v3 }
 0x21d   :  { %1422 = vmatpush3.bf16.msra.mxu1 %v1818_v12 }
 0x21e   :  { %1423 = vmatprep.subr.bf16.mxu1 %v1656_v3 }
 0x221   :  { %1424 = vmatpush3.bf16.msra.mxu1 %v1830_v13 }
 0x222   :  { %1449 = vmatprep.subr.bf16.mxu1 %v1656_v3 }
 0x2d7   :  { %v392_v55 = vpop.f32.mrb[12].mxu1 }
 0x2d8   :  { %v398_v56 = vadd.f32 %v392_v55, %v1858_v17  ;;  %v1387_v57 = vpop.f32.mrb[13].mxu1 }
 0x2d9   :  { %v395_v58 = vpop.f32.mrb[14].mxu1 }
 0x2da   :  { %1604 = vtanh.f32 %v398_v56  ;;  %v1388_v59 = vpop.f32.mrb[15].mxu1 }
 0x2e4   :  { %v1605_v60 = vpop.eup %1604 }
 0x2e5   :  { %v403_v61 = vsel %vm400_vm6, %v1605_v60, 0.0  ;;  %v405_v62 = vpack.c.bf16 %v1605_v60, %v1605_v60  ;;  %v1584_v60 = vld [vmem:[%s2143_s11] sm:$0xff]  }
 0x2e6   :  { %v404_v63 = vadd.f32 %v403_v61, %v356_v54 }
 0x2e7   :  { %1406 = vmatmul.mubr.bf16.vlgmr.msra.gmra.mrb[4].mxu0 %v405_v62  ;;  %v1587_v62 = vld [vmem:[%s2143_s11 + $0x18] sm:$0xff]  }
 0x2e8   :  { %1430 = vmatpush3.bf16.msra.mxu0 %v1754_v4  ;;  %1445 = vmatprep.mubr.msk.bf16.mxu0 %vm1657_vm1, %v1656_v3 }
 0x2e9   :  { %1431 = vmatprep.subr.bf16.mxu0 %v1656_v3 }
 0x2ec   :  { %1432 = vmatpush3.bf16.msra.mxu0 %v1766_v5 }
 0x2ed   :  { %1433 = vmatprep.subr.bf16.mxu0 %v1656_v3 }
 0x2f0   :  { %1434 = vmatpush3.bf16.msra.mxu0 %v1782_v8 }
 0x2f1   :  { %1435 = vmatprep.subr.bf16.mxu0 %v1656_v3 }
 0x2f4   :  { %1436 = vmatpush3.bf16.msra.mxu0 %v1788_v9 }
 0x2f5   :  { %1437 = vmatprep.subr.bf16.mxu0 %v1656_v3 }
 0x2f8   :  { %1438 = vmatpush3.bf16.msra.mxu0 %v1800_v10 }
 0x2f9   :  { %1439 = vmatprep.subr.bf16.mxu0 %v1656_v3 }
 0x2fc   :  { %1440 = vmatpush3.bf16.msra.mxu0 %v1809_v11 }
 0x2fd   :  { %1441 = vmatprep.subr.bf16.mxu0 %v1656_v3 }
 0x300   :  { %1442 = vmatpush3.bf16.msra.mxu0 %v1818_v12 }
 0x301   :  { %1443 = vmatprep.subr.bf16.mxu0 %v1656_v3 }
 0x304   :  { %1444 = vmatpush3.bf16.msra.mxu0 %v1830_v13 }
 0x305   :  { %1469 = vmatprep.subr.bf16.mxu0 %v1656_v3 }
 0x3ba   :  { %v440_v0 = vpop.f32.mrb[4].mxu0 }
 0x3bb   :  { %v446_v1 = vadd.f32 %v440_v0, %v1860_v20  ;;  %v1407_v2 = vpop.f32.mrb[5].mxu0  ;;  %v1589_v0 = vld [vmem:[%s2143_s11 + $0x28] sm:$0xff]  }
 0x3bc   :  { %v443_v6 = vpop.f32.mrb[6].mxu0  ;;  %v1591_v2 = vld [vmem:[%s2143_s11 + $0x38] sm:$0xff]  }
 0x3bd   :  { %1606 = vtanh.f32 %v446_v1  ;;  %v1408_v7 = vpop.f32.mrb[7].mxu0  ;;  %v1590_v1 = vld [vmem:[%s2143_s11 + $0x30] sm:$0xff]  }
 0x3c7   :  { %v1607_v14 = vpop.eup %1606 }
 0x3c8   :  { %v451_v15 = vsel %vm448_vm7, %v1607_v14, 0.0  ;;  %v453_v16 = vpack.c.bf16 %v1607_v14, %v1607_v14 }
 0x3c9   :  { %v452_v17 = vadd.f32 %v451_v15, %v404_v63  ;;  %v1588_v63 = vld [vmem:[%s2143_s11 + $0x20] sm:$0xff]  }
 0x3ca   :  { %1426 = vmatmul.mubr.bf16.vlgmr.msra.gmra.mrb[16].mxu1 %v453_v16  ;;  %v1181_v16 = vld [vmem:[%s2142_s10] ss:$0 sm:$0xff] }
 0x3cb   :  { %1450 = vmatpush3.bf16.msra.mxu1 %v1754_v4  ;;  %1465 = vmatprep.mubr.msk.bf16.mxu1 %vm1657_vm1, %v1656_v3 }
 0x3cc   :  { %1451 = vmatprep.subr.bf16.mxu1 %v1656_v3 }
 0x3cf   :  { %1452 = vmatpush3.bf16.msra.mxu1 %v1766_v5 }
 0x3d0   :  { %1453 = vmatprep.subr.bf16.mxu1 %v1656_v3 }
 0x3d3   :  { %1454 = vmatpush3.bf16.msra.mxu1 %v1782_v8 }
 0x3d4   :  { %1455 = vmatprep.subr.bf16.mxu1 %v1656_v3 }
 0x3d7   :  { %1456 = vmatpush3.bf16.msra.mxu1 %v1788_v9 }
 0x3d8   :  { %1457 = vmatprep.subr.bf16.mxu1 %v1656_v3 }
 0x3db   :  { %1458 = vmatpush3.bf16.msra.mxu1 %v1800_v10 }
 0x3dc   :  { %1459 = vmatprep.subr.bf16.mxu1 %v1656_v3 }
 0x3df   :  { %1460 = vmatpush3.bf16.msra.mxu1 %v1809_v11 }
 0x3e0   :  { %1461 = vmatprep.subr.bf16.mxu1 %v1656_v3 }
 0x3e3   :  { %1462 = vmatpush3.bf16.msra.mxu1 %v1818_v12 }
 0x3e4   :  { %1463 = vmatprep.subr.bf16.mxu1 %v1656_v3 }
 0x3e7   :  { %1464 = vmatpush3.bf16.msra.mxu1 %v1830_v13 }
 0x49d   :  { %v488_v18 = vpop.f32.mrb[16].mxu1 }
 0x49e   :  { %v494_v19 = vadd.f32 %v488_v18, %v1864_v26  ;;  %v1427_v20 = vpop.f32.mrb[17].mxu1 }
 0x49f   :  { %v491_v21 = vpop.f32.mrb[18].mxu1 }
 0x4a0   :  { %1608 = vtanh.f32 %v494_v19  ;;  %v1428_v22 = vpop.f32.mrb[19].mxu1 }
 0x4aa   :  { %v1609_v23 = vpop.eup %1608 }
 0x4ab   :  { %v499_v25 = vsel %vm496_vm8, %v1609_v23, 0.0  ;;  %v501_v27 = vpack.c.bf16 %v1609_v23, %v1609_v23 }
 0x4ac   :  { %v500_v29 = vadd.f32 %v499_v25, %v452_v17 }
 0x4ad   :  { %1446 = vmatmul.mubr.bf16.vlgmr.msra.gmra.mrb[8].mxu0 %v501_v27 }
 0x4ae   :  { %1470 = vmatpush3.bf16.msra.mxu0 %v1754_v4  ;;  %1485 = vmatprep.mubr.msk.bf16.mxu0 %vm1657_vm1, %v1656_v3 }
 0x4af   :  { %1471 = vmatprep.subr.bf16.mxu0 %v1656_v3 }
 0x4b2   :  { %1472 = vmatpush3.bf16.msra.mxu0 %v1766_v5 }
 0x4b3   :  { %1473 = vmatprep.subr.bf16.mxu0 %v1656_v3 }
 0x4b6   :  { %1474 = vmatpush3.bf16.msra.mxu0 %v1782_v8 }
 0x4b7   :  { %1475 = vmatprep.subr.bf16.mxu0 %v1656_v3 }
 0x4ba   :  { %1476 = vmatpush3.bf16.msra.mxu0 %v1788_v9 }
 0x4bb   :  { %1477 = vmatprep.subr.bf16.mxu0 %v1656_v3 }
 0x4be   :  { %1478 = vmatpush3.bf16.msra.mxu0 %v1800_v10 }
 0x4bf   :  { %1479 = vmatprep.subr.bf16.mxu0 %v1656_v3 }
 0x4c2   :  { %1480 = vmatpush3.bf16.msra.mxu0 %v1809_v11 }
 0x4c3   :  { %1481 = vmatprep.subr.bf16.mxu0 %v1656_v3 }
 0x4c6   :  { %1482 = vmatpush3.bf16.msra.mxu0 %v1818_v12  ;;  %v1576_v12 = vld [vmem:[%s2140_s8] sm:$0xff]  }
 0x4c7   :  { %1483 = vmatprep.subr.bf16.mxu0 %v1656_v3  ;;  %1489 = vmatprep.subr.bf16.mxu1 %v1576_v12 }
 0x4ca   :  { %1484 = vmatpush3.bf16.msra.mxu0 %v1830_v13 }
 0x4cb   :  { %1495 = vmatprep.subr.bf16.mxu0 %v1656_v3 }
 0x580   :  { %v536_v4 = vpop.f32.mrb[8].mxu0 }
 0x581   :  { %v542_v5 = vadd.f32 %v536_v4, %v1868_v30  ;;  %v1447_v8 = vpop.f32.mrb[9].mxu0 }
 0x582   :  { %v539_v9 = vpop.f32.mrb[10].mxu0 }
 0x583   :  { %1610 = vtanh.f32 %v542_v5  ;;  %v1448_v10 = vpop.f32.mrb[11].mxu0 }
 0x58d   :  { %v1611_v11 = vpop.eup %1610 }
 0x58e   :  { %v547_v26 = vsel %vm544_vm9, %v1611_v11, 0.0  ;;  %v549_v31 = vpack.c.bf16 %v1611_v11, %v1611_v11 }
 0x58f   :  { %v548_v32 = vadd.f32 %v547_v26, %v500_v29 }
 0x590   :  { %1466 = vmatmul.mubr.bf16.vlgmr.msra.gmra.mrb[20].mxu1 %v549_v31 }
 0x591   :  { %1490 = vmatpush3.bf16.msra.mxu1 %v1576_v12  ;;  %1491 = vmatprep.mubr.msk.bf16.mxu1 %vm120_vm0, %v1578_v45 }
 0x592   :  { %1515 = vmatprep.subr.bf16.mxu1 %v1656_v3 }
 0x598   :  { %1492 = vmatmul.mubr.msk.bf16.vlgmr.msra.gmra.mrb[24].mxu1 %vm120_vm0, %v1579_v46  ;;  %vm880_vm0 = vcmask 60416  }
 0x599   :  { %1531 = vmatprep.mubr.msk.bf16.mxu1 %vm1657_vm1, %v1656_v3 }
 0x663   :  { %v584_v13 = vpop.f32.mrb[20].mxu1 }
 0x664   :  { %v590_v30 = vadd.f32 %v584_v13, %v1862_v24  ;;  %v1467_v33 = vpop.f32.mrb[21].mxu1  ;;  %v1574_v24 = vld [vmem:[%s2141_s9 + $0x8] sm:$0xff]   ;;  %v1592_v13 = vld [vmem:[%s2144_s12] sm:$0xff]  }
 0x665   :  { %v587_v34 = vpop.f32.mrb[22].mxu1  ;;  %1516 = vmatpush3.bf16.msra.mxu1 %v1592_v13  ;;  %v1594_v33 = vld [vmem:[%s2144_s12 + $0x10] sm:$0xff]  }
 0x666   :  { %1612 = vtanh.f32 %v590_v30  ;;  %v1468_v35 = vpop.f32.mrb[23].mxu1  ;;  %v1593_v30 = vld [vmem:[%s2144_s12 + $0x8] sm:$0xff]   ;;  %1517 = vmatprep.subr.bf16.mxu1 %v1656_v3  ;;  %v1595_v34 = vld [vmem:[%s2144_s12 + $0x18] sm:$0xff]  }
 0x667   :  { %v1596_v35 = vld [vmem:[%s2144_s12 + $0x20] sm:$0xff]  }
 0x669   :  { %1518 = vmatpush3.bf16.msra.mxu1 %v1593_v30 }
 0x66a   :  { %1519 = vmatprep.subr.bf16.mxu1 %v1656_v3 }
 0x66b   :  { %v1493_v6 = vpop.f32.mrb[24].mxu1 }
 0x66c   :  { %v714_v7 = vpop.f32.mrb[25].mxu1  ;;  %v723_v17 = vadd.f32 %v1493_v6, %v1181_v16 }
 0x66d   :  { %v1494_v14 = vpop.f32.mrb[26].mxu1  ;;  %v715_v18 = vadd.f32 %v1181_v16, %v714_v7  ;;  %1520 = vmatpush3.bf16.msra.mxu1 %v1594_v33 }
 0x66e   :  { %v717_v15 = vpop.f32.mrb[27].mxu1  ;;  %v726_v19 = vadd.f32 %v1494_v14, %v1181_v16  ;;  %1521 = vmatprep.subr.bf16.mxu1 %v1656_v3 }
 0x66f   :  { %v718_v20 = vadd.f32 %v1181_v16, %v717_v15  ;;  %v72_v16 = vstv %s1161_s5 }
 0x670   :  { %v1613_v36 = vpop.eup %1612 }
 0x671   :  { %v597_v38 = vpack.c.bf16 %v1613_v36, %v1613_v36  ;;  %v595_v41 = vsel %vm592_vm10, %v1613_v36, 0.0  ;;  %1522 = vmatpush3.bf16.msra.mxu1 %v1595_v34  ;;  %v57_v36 = vand.u32 127, %v54_v39 }
 0x672   :  { %v596_v42 = vadd.f32 %v595_v41, %v548_v32  ;;  %1523 = vmatprep.subr.bf16.mxu1 %v1656_v3 }
 0x673   :  { %1486 = vmatmul.mubr.bf16.vlgmr.msra.gmra.mrb[12].mxu0 %v597_v38  ;;  %v858_v41 = vsub.s32 %v57_v36, %v1889_v40  ;;  %vm70_vm2 = vcmp.eq.s32.totalorder %v57_v36, 1 }
 0x674   :  { %1496 = vmatpush3.bf16.msra.mxu0 %v1573_v37  ;;  %1511 = vmatprep.mubr.msk.bf16.mxu0 %vm1657_vm1, %v1656_v3 }
 0x675   :  { %1497 = vmatprep.subr.bf16.mxu0 %v1656_v3  ;;  %1524 = vmatpush3.bf16.msra.mxu1 %v1596_v35 }
 0x676   :  { %1525 = vmatprep.subr.bf16.mxu1 %v1656_v3 }
 0x678   :  { %1498 = vmatpush3.bf16.msra.mxu0 %v1574_v24  ;;  %v850_v24 = vld [vmem:[%s2135_s3] sm:$0xf]  ;;  %s63_s3 = sld [smem:[#allocation4]] }
 0x679   :  { %1499 = vmatprep.subr.bf16.mxu0 %v1656_v3  ;;  %vm851_vm15 = vcmp.gt.f32.partialorder %v850_v24, 0.5 }
 0x67c   :  { %1500 = vmatpush3.bf16.msra.mxu0 %v1575_v43 }
 0x67d   :  { %1501 = vmatprep.subr.bf16.mxu0 %v1656_v3 }
 0x67e   :  { %v64_v14 = vstv %s63_s3 }
 0x680   :  { %1502 = vmatpush3.bf16.msra.mxu0 %v1577_v44 }
 0x681   :  { %1503 = vmatprep.subr.bf16.mxu0 %v1656_v3 }
 0x684   :  { %1504 = vmatpush3.bf16.msra.mxu0 %v1580_v47 }
 0x685   :  { %1505 = vmatprep.subr.bf16.mxu0 %v1656_v3 }
 0x688   :  { %1506 = vmatpush3.bf16.msra.mxu0 %v1581_v48 }
 0x689   :  { %1507 = vmatprep.subr.bf16.mxu0 %v1656_v3 }
 0x68c   :  { %1508 = vmatpush3.bf16.msra.mxu0 %v1582_v50 }
 0x68d   :  { %1509 = vmatprep.subr.bf16.mxu0 %v1656_v3 }
 0x690   :  { %1510 = vmatpush3.bf16.msra.mxu0 %v1583_v51 }
 0x691   :  { %1535 = vmatprep.subr.bf16.mxu0 %v1656_v3 }
 0x746   :  { %v632_v52 = vpop.f32.mrb[12].mxu0 }
 0x747   :  { %v638_v53 = vadd.f32 %v632_v52, %v1866_v28  ;;  %v1487_v54 = vpop.f32.mrb[13].mxu0  ;;  %v1585_v28 = vld [vmem:[%s2143_s11 + $0x8] sm:$0xff]  }
 0x748   :  { %v635_v55 = vpop.f32.mrb[14].mxu0 }
 0x749   :  { %1614 = vtanh.f32 %v638_v53  ;;  %v1488_v56 = vpop.f32.mrb[15].mxu0 }
 0x74a   :  { %1616 = vtanh.f32 %v723_v17 }
 0x74b   :  { %1618 = vtanh.f32 %v715_v18  ;;  %v1597_v18 = vld [vmem:[%s2144_s12 + $0x28] sm:$0xff]  }
 0x74c   :  { %1620 = vtanh.f32 %v726_v19  ;;  %1526 = vmatpush3.bf16.msra.mxu1 %v1597_v18 }
 0x74d   :  { %1622 = vtanh.f32 %v718_v20  ;;  %1527 = vmatprep.subr.bf16.mxu1 %v1656_v3 }
 0x753   :  { %v1615_v57 = vpop.eup %1614 }
 0x754   :  { %v643_v58 = vsel %vm640_vm11, %v1615_v57, 0.0  ;;  %v2064_v21 = vpop.eup %1616 }
 0x755   :  { %v644_v59 = vadd.f32 %v643_v58, %v596_v42  ;;  %v2066_v22 = vpop.eup %1618 }
 0x756   :  { %v2068_v25 = vpop.eup %1620 }
 0x757   :  { %v733_v61 = vpack.c.bf16 %v644_v59, %v644_v59  ;;  %v2072_v5 = vpop.eup %1622 }
 0x759   :  { %1512 = vmatmul.mubr.bf16.vlgmr.msra.gmra.mrb[16].mxu0 %v733_v61 }
 0x75a   :  { %1536 = vmatpush3.bf16.msra.mxu0 %v1584_v60  ;;  %1551 = vmatprep.mubr.msk.bf16.mxu0 %vm1657_vm1, %v1656_v3  ;;  %vm62_vm1 = vcmp.eq.s32.totalorder %v57_v36, 0 }
 0x75b   :  { %1537 = vmatprep.subr.bf16.mxu0 %v1656_v3  ;;  %v65_v15 = vsel %vm62_vm1, %v64_v14, 4294967295 }
 0x75c   :  { %v73_v17 = vsel %vm70_vm2, %v72_v16, %v65_v15 }
 0x75d   :  { %vm74_vm3 = vcmp.eq.s32.totalorder %v1889_v40, %v73_v17 }
 0x75e   :  { %1538 = vmatpush3.bf16.msra.mxu0 %v1585_v28  ;;  %v1162_v20 = vsel %vm74_vm3, 1.0, %v1656_v3 }
 0x75f   :  { %1539 = vmatprep.subr.bf16.mxu0 %v1656_v3 }
 0x762   :  { %1540 = vmatpush3.bf16.msra.mxu0 %v1586_v49 }
 0x763   :  { %1541 = vmatprep.subr.bf16.mxu0 %v1656_v3 }
 0x766   :  { %1542 = vmatpush3.bf16.msra.mxu0 %v1587_v62 }
 0x767   :  { %1543 = vmatprep.subr.bf16.mxu0 %v1656_v3 }
 0x76a   :  { %1544 = vmatpush3.bf16.msra.mxu0 %v1588_v63 }
 0x76b   :  { %1545 = vmatprep.subr.bf16.mxu0 %v1656_v3 }
 0x76e   :  { %1546 = vmatpush3.bf16.msra.mxu0 %v1589_v0 }
 0x76f   :  { %1547 = vmatprep.subr.bf16.mxu0 %v1656_v3 }
 0x772   :  { %1548 = vmatpush3.bf16.msra.mxu0 %v1590_v1 }
 0x773   :  { %1549 = vmatprep.subr.bf16.mxu0 %v1656_v3 }
 0x776   :  { %1550 = vmatpush3.bf16.msra.mxu0 %v1591_v2 }
 0x779   :  { %1552 = vmatmul.mubr.bf16.vlgmr.msra.gmra.mrb[20].mxu0 %v733_v61 }
 0x82c   :  { %v832_v23 = vpop.f32.mrb[16].mxu0 }
 0x82d   :  { %v1513_v27 = vpop.f32.mrb[17].mxu0  ;;  %v840_v29 = vmul.f32 %v2064_v21, %v832_v23  ;;  %v838_v4 = vmul.f32 %v2066_v22, %v832_v23  ;;  %v841_v10 = vmul.f32 %v2068_v25, %v832_v23  ;;  %v839_v11 = vmul.f32 %v2072_v5, %v832_v23  ;;  %v1598_v23 = vld [vmem:[%s2144_s12 + $0x30] sm:$0xff]  }
 0x82e   :  { %v835_v8 = vpop.f32.mrb[18].mxu0  ;;  %1528 = vmatpush3.bf16.msra.mxu1 %v1598_v23 }
 0x82f   :  { %846 = vadd.xlane.f32.xlu1 %v840_v29  ;;  %842 = vadd.xlane.f32.xlu0 %v838_v4  ;;  %v1514_v9 = vpop.f32.mrb[19].mxu0  ;;  %v912_v29 = vsub.s32 1, %v1889_v40  ;;  %v905_v4 = vsub.s32 0, %v1889_v40 }
 0x830   :  { %1529 = vmatprep.subr.bf16.mxu1 %v1656_v3  ;;  %v1599_v9 = vld [vmem:[%s2144_s12 + $0x38] sm:$0xff]  }
 0x832   :  { %1530 = vmatpush3.bf16.msra.mxu1 %v1599_v9 }
 0x833   :  { %848 = vadd.xlane.f32.xlu1 %v841_v10  ;;  %844 = vadd.xlane.f32.xlu0 %v839_v11 }
 0x84c   :  { %v2076_v26 = vpop.f32.mrb[20].mxu0 }
 0x84d   :  { %v1553_v31 = vpop.f32.mrb[21].mxu0 }
 0x84e   :  { %v1144_v32 = vpop.f32.mrb[22].mxu0  ;;  %v919_v31 = vsub.s32 2, %v1889_v40 }
 0x84f   :  { %v1554_v12 = vpop.f32.mrb[23].mxu0 }
 0x850   :  { %v926_v12 = vsub.s32 3, %v1889_v40 }
 0x8bc   :  { %v847_v37 = vpop.xlane.xlu1 %846  ;;  %v843_v38 = vpop.xlane.xlu0 %842 }
 0x8bd   :  { %v859_v44 = vrot.slane %v843_v38, %v858_v41  ;;  %v867_v46 = vrot.slane %v847_v37, %v858_v41 }
 0x8c0   :  { %v849_v42 = vpop.xlane.xlu1 %848  ;;  %v845_v43 = vpop.xlane.xlu0 %844 }
 0x8c1   :  { %v863_v45 = vrot.slane %v845_v43, %v858_v41  ;;  %v871_v47 = vrot.slane %v849_v42, %v858_v41 }
 0x8c3   :  { %v873_v48 = vsel %vm872_vm12, %v863_v45, %v859_v44  ;;  %v1211_v44 = vld [vmem:[%s2145_s13] ss:$0 sm:$0xff] }
 0x8c4   :  { %v875_v39 = vsel %vm874_vm13, %v867_v46, %v873_v48 }
 0x8c5   :  { %v877_v50 = vsel %vm876_vm14, %v871_v47, %v875_v39 }
 0x8c6   :  { %v879_v51 = vsel %vm851_vm15, %v877_v50, -1e+09 }
 0x8c7   :  { %v881_v52 = vsel %vm880_vm0, %v879_v51, -inf }
 0x8c8   :  { %v882_v53 = vrot.slane %v881_v52, 4 }
 0x8ca   :  { %v883_v54 = vmax.f32 %v881_v52, %v882_v53 }
 0x8cc   :  { %v884_v55 = vrot.slane %v883_v54, 2 }
 0x8ce   :  { %v885_v56 = vmax.f32 %v883_v54, %v884_v55 }
 0x8d0   :  { %v886_v57 = vrot.slane %v885_v56, 1 }
 0x8d2   :  { %v887_v58 = vmax.f32 %v885_v56, %v886_v57 }
 0x8d4   :  { %v888_v59 = vsub.f32 %v879_v51, %v887_v58 }
 0x8d6   :  { %v889_v60 = vmul.f32 1.442695, %v888_v59 }
 0x8d8   :  { %1624 = vpow2.f32 %v889_v60 }
 0x8e2   :  { %v1625_v61 = vpop.eup %1624 }
 0x8e3   :  { %v891_v28 = vmul.f32 %v1625_v61, %v850_v24 }
 0x8e5   :  { %v892_v49 = vsel %vm880_vm0, %v891_v28, 0.0 }
 0x8e6   :  { %v893_v62 = vrot.slane %v892_v49, 4 }
 0x8e8   :  { %v894_v63 = vadd.f32 %v893_v62, %v892_v49 }
 0x8ea   :  { %v895_v0 = vrot.slane %v894_v63, 2 }
 0x8ec   :  { %v896_v1 = vadd.f32 %v895_v0, %v894_v63 }
 0x8ee   :  { %v897_v2 = vrot.slane %v896_v1, 1 }
 0x8f0   :  { %v898_v6 = vadd.f32 %v897_v2, %v896_v1 }
 0x8f2   :  { %v899_v7 = vmax.f32 %v898_v6, 1e-09 }
 0x8f4   :  { %1626 = vrcp.f32 %v899_v7 }
 0x8fe   :  { %v1627_v19 = vpop.eup %1626 }
 0x8ff   :  { %v901_v27 = vmul.f32 %v1627_v19, %v891_v28 }
 0x901   :  { %v902_v8 = vmul.f32 %v1162_v20, %v901_v27 }
 0x903   :  { %v913_v10 = vrot.slane %v902_v8, %v912_v29  ;;  %v906_v11 = vrot.slane %v902_v8, %v905_v4  ;;  %v920_v32 = vrot.slane %v902_v8, %v919_v31  ;;  %v927_v13 = vrot.slane %v902_v8, %v926_v12 }
 0x905   :  { %915 = vbcast.lane.b32.xlu1 %v913_v10, 256  ;;  %908 = vbcast.lane.b32.xlu0 %v906_v11, 256 }
 0x909   :  { %922 = vbcast.lane.b32.xlu1 %v920_v32, 256 }
 0x90d   :  { %929 = vbcast.lane.b32.xlu1 %v927_v13, 256 }
 0x977   :  { %v916_v30 = vpop.permute.xlu1 %915  ;;  %v909_v33 = vpop.permute.xlu0 %908 }
 0x978   :  { %v932_v3 = vmul.f32 %v2072_v5, %v916_v30  ;;  %v931_v34 = vmul.f32 %v2066_v22, %v909_v33 }
 0x97a   :  { %v935_v37 = vadd.f32 %v932_v3, %v931_v34 }
 0x97b   :  { %v923_v35 = vpop.permute.xlu1 %922 }
 0x97c   :  { %v933_v36 = vmul.f32 %v2064_v21, %v923_v35 }
 0x97e   :  { %v936_v41 = vadd.f32 %v935_v37, %v933_v36 }
 0x97f   :  { %v930_v38 = vpop.permute.xlu1 %929 }
 0x980   :  { %v934_v42 = vmul.f32 %v2068_v25, %v930_v38 }
 0x982   :  { %v937_v24 = vadd.f32 %v936_v41, %v934_v42 }
 0x984   :  { %v954_v43 = vpack.c.bf16 %v937_v24, %v937_v24 }
 0x986   :  { %1532 = vmatmul.mubr.bf16.vlgmr.msra.gmra.mrb[28].mxu1 %v954_v43 }
 0xa59   :  { %v1053_v40 = vpop.f32.mrb[28].mxu1 }
 0xa5a   :  { %v1142_v5 = vadd.f32 %v2076_v26, %v1053_v40  ;;  %v1533_v45 = vpop.f32.mrb[29].mxu1 }
 0xa5b   :  { %v1056_v22 = vpop.f32.mrb[30].mxu1 }
 0xa5c   :  { %v1154_v46 = vadd.f32 %v1211_v44, %v1142_v5  ;;  %v1534_v47 = vpop.f32.mrb[31].mxu1 }
 0xa5e   :  { %1155 = vst [vmem:[%s2146_s14] sm:$0xff] %v1154_v46 }

</bundles_post_ra>
